<compile_context>
chip_gen: v6e
topology: v6e:2x2x1
jax: 0.10.0
libtpu: 0.0.40
codegen_flags: <defaults>
</compile_context>

<pallas_src>
import functools

import jax
import jax.numpy as jnp
from jax import lax
from jax.experimental import pallas as pl
from jax.experimental.pallas import tpu as pltpu


def _round_up(x: int, m: int) -> int:
    return (x + m - 1) // m * m


def _sublane(dtype) -> int:
    # Packed sublane multiple: 8 for 32-bit, 16 for 16-bit, 32 for 8-bit.
    itemsize = jnp.dtype(dtype).itemsize
    return max(8, (4 // itemsize) * 8)


def _decoder_kernel(x_ref, w_ref, b_ref, o_ref, *, compute_dtype):
    # x_ref : (TM, K)  activations in the caller's dtype (cast on VPU here)
    # w_ref : (N, K)   weight in PyTorch layout, resident in VMEM across steps
    # b_ref : (1, N)   bias, resident in VMEM
    # o_ref : (TM, N)  output tile in the caller's dtype
    x = x_ref[...].astype(compute_dtype)
    w = w_ref[...].astype(compute_dtype)  # no-op when pre-cast by the caller
    acc = lax.dot_general(
        x,
        w,
        dimension_numbers=(((1,), (1,)), ((), ())),  # contract K of both -> (TM, N)
        preferred_element_type=jnp.float32,          # f32 accumulation on the MXU
    )
    o_ref[...] = (acc + b_ref[...].astype(jnp.float32)).astype(o_ref.dtype)


def _pallas_decoder(x2d, weight, bias, out_dtype, compute_dtype, block_m):
    M, K = x2d.shape
    N = weight.shape[0]

    # Sublane alignment for the row-tile.
    align = max(_sublane(x2d.dtype), _sublane(compute_dtype), _sublane(out_dtype))

    # Row tile: cap at block_m, give the grid >=2 steps when possible so the
    # two v7x TensorCores both get work, and stay sublane-aligned.
    tm = min(block_m, max(align, _round_up(pl.cdiv(M, 2), align)))
    tm = min(tm, _round_up(M, align))
    grid = (pl.cdiv(M, tm),)

    b2d = bias.reshape(1, N)

    # Explicit VMEM budget: resident weight + bias, double-buffered x / out.
    isz = lambda dt: jnp.dtype(dt).itemsize
    vmem_needed = 2 * (
        N * K * isz(weight.dtype)
        + N * isz(bias.dtype)
        + tm * K * isz(x2d.dtype)
        + tm * N * isz(out_dtype)
    )
    vmem_limit = int(min(100 * 2**20, max(16 * 2**20, 2 * vmem_needed)))

    return pl.pallas_call(
        functools.partial(_decoder_kernel, compute_dtype=compute_dtype),
        out_shape=jax.ShapeDtypeStruct((M, N), out_dtype),
        grid=grid,
        in_specs=[
            pl.BlockSpec((tm, K), lambda i: (i, 0)),   # activations: tiled over rows
            pl.BlockSpec((N, K), lambda i: (0, 0)),    # weight: resident in VMEM
            pl.BlockSpec((1, N), lambda i: (0, 0)),    # bias: resident in VMEM
        ],
        out_specs=pl.BlockSpec((tm, N), lambda i: (i, 0)),
        compiler_params=pltpu.CompilerParams(
            # No reduction axis: M is fully parallel (megacore split on v7x).
            dimension_semantics=("parallel",),
            vmem_limit_bytes=vmem_limit,
        ),
    )(x2d, weight, b2d)


@functools.partial(
    jax.jit, static_argnames=("compute_dtype", "block_m", "min_pallas_rows")
)
def decoder_forward(
    data,
    weight,
    bias,
    *,
    compute_dtype=jnp.float32,
    block_m=1024,
    min_pallas_rows=0,
):
    """Pallas equivalent of Decoder.forward (a single Linear layer).

    data  : (..., latent_dim)
    weight: (input_dim, latent_dim)   -- PyTorch nn.Linear convention (NOT transposed).
            For bf16 compute, pre-cast the weight once at parameter-conversion
            time and pass it here (the wrapper never casts the weight).
    bias  : (input_dim,)
    returns (..., input_dim) in data.dtype
    """
    out_dtype = data.dtype
    K = data.shape[-1]            # latent_dim
    N = weight.shape[0]           # input_dim
    lead_shape = data.shape[:-1]

    x2d = data.reshape(-1, K)
    M = x2d.shape[0]

    if M < min_pallas_rows:
        # Tiny decoders: fixed pallas_call overhead dominates -> let XLA fuse it.
        acc = jnp.dot(
            x2d.astype(compute_dtype),
            weight.astype(compute_dtype).T,
            preferred_element_type=jnp.float32,
        )
        out2d = (acc + bias.astype(jnp.float32)).astype(out_dtype)
    else:
        out2d = _pallas_decoder(x2d, weight, bias, out_dtype, compute_dtype, block_m)

    return out2d.reshape(*lead_shape, N)


if __name__ == "__main__":
    # Small shapes consistent with the module's decoder forward.
    batch, seq = 2, 8
    latent_dim, input_dim = 32, 64

    key = jax.random.PRNGKey(0)
    k_data, k_w, k_data2, k_b2 = jax.random.split(key, 4)

    data = jax.random.normal(k_data, (batch, seq, latent_dim), dtype=jnp.float32)

    # utils.init_network_weights: Normal(0, 0.1) weights, zero bias.
    weight = 0.1 * jax.random.normal(k_w, (input_dim, latent_dim), dtype=jnp.float32)
    bias = jnp.zeros((input_dim,), dtype=jnp.float32)

    ref = data @ weight.T + bias

    # 1) f32 Pallas path (default dtype): tight check vs the plain-JAX reference.
    out_f32 = decoder_forward(data, weight, bias)
    out_f32 = jax.block_until_ready(out_f32)
    assert out_f32.shape == (batch, seq, input_dim)
    assert jnp.allclose(out_f32, ref, atol=1e-4, rtol=1e-4)

    # 2) Opt-in bf16 compute path: weight pre-cast ONCE (parameter conversion),
    #    activations cast in-kernel, f32 accumulation -> looser tolerance.
    weight_bf16 = weight.astype(jnp.bfloat16)
    out_bf16 = decoder_forward(data, weight_bf16, bias, compute_dtype=jnp.bfloat16)
    out_bf16 = jax.block_until_ready(out_bf16)
    assert out_bf16.shape == (batch, seq, input_dim)
    assert jnp.allclose(out_bf16, ref, atol=5e-2, rtol=5e-2)

    # 3) Ragged-M path with a nonzero bias: M = 3*171 = 513 -> tm=264, grid=(2,),
    #    second block partially masked (no padding pass, no post-slice).
    data2 = jax.random.normal(k_data2, (3, 171, latent_dim), dtype=jnp.float32)
    bias2 = 0.1 * jax.random.normal(k_b2, (input_dim,), dtype=jnp.float32)
    ref2 = data2 @ weight.T + bias2
    out2 = decoder_forward(data2, weight, bias2, block_m=1024)
    out2 = jax.block_until_ready(out2)
    assert out2.shape == (3, 171, input_dim)
    assert jnp.allclose(out2, ref2, atol=1e-4, rtol=1e-4)

    # 4) Shape-based dispatch: small M falls back to plain XLA matmul.
    out_xla = decoder_forward(data, weight, bias, min_pallas_rows=1_000_000)
    out_xla = jax.block_until_ready(out_xla)
    assert jnp.allclose(out_xla, ref, atol=1e-4, rtol=1e-4)

    print("KERNEL_OK")
</pallas_src>

<mosaic_0001>
module attributes {stable_mosaic.version = 11 : i64} {
  func.func @_decoder_kernel(%arg0: i32, %arg1: memref<8x32xf32, #tpu.memory_space<vmem>>, %arg2: memref<64x32xf32, #tpu.memory_space<vmem>>, %arg3: memref<1x64xf32, #tpu.memory_space<vmem>>, %arg4: memref<8x64xf32, #tpu.memory_space<vmem>>) attributes {dimension_semantics = [#tpu.dimension_semantics<parallel>], iteration_bounds = array<i64: 2>, scalar_prefetch = 0 : i64, scratch_operands = 0 : i64, tpu.core_type = #tpu.core_type<tc>, window_params = [{transform_indices = @transform_0, window_bounds = array<i64: 8, 32>}, {pipeline_mode = #tpu.pipeline_mode<synchronous>, transform_indices = @transform_1, window_bounds = array<i64: 64, 32>}, {pipeline_mode = #tpu.pipeline_mode<synchronous>, transform_indices = @transform_2, window_bounds = array<i64: 1, 64>}, {transform_indices = @transform_3, window_bounds = array<i64: 8, 64>}]} {
    %c0 = arith.constant 0 : index
    %c0_0 = arith.constant 0 : index
    %0 = vector.load %arg1[%c0, %c0_0] : memref<8x32xf32, #tpu.memory_space<vmem>>, vector<8x32xf32>
    %c0_1 = arith.constant 0 : index
    %c0_2 = arith.constant 0 : index
    %1 = vector.load %arg2[%c0_1, %c0_2] : memref<64x32xf32, #tpu.memory_space<vmem>>, vector<64x32xf32>
    %cst = arith.constant dense<0.000000e+00> : vector<8x64xf32>
    %2 = tpu.matmul %0, %1, %cst {dimension_numbers = #tpu.dot_dimension_numbers<[1], [1], [0], [0], [0, 0, 1, 0], [], []>} : vector<8x32xf32>, vector<64x32xf32>, vector<8x64xf32> -> vector<8x64xf32>
    %c0_3 = arith.constant 0 : index
    %c0_4 = arith.constant 0 : index
    %3 = vector.load %arg3[%c0_3, %c0_4] : memref<1x64xf32, #tpu.memory_space<vmem>>, vector<1x64xf32>
    %4 = vector.broadcast %3 : vector<1x64xf32> to vector<8x64xf32>
    %5 = arith.addf %2, %4 : vector<8x64xf32>
    %c0_5 = arith.constant 0 : index
    %c0_6 = arith.constant 0 : index
    %6 = vector.load %arg4[%c0_5, %c0_6] : memref<8x64xf32, #tpu.memory_space<vmem>>, vector<8x64xf32>
    tpu.vector_store %arg4[%c0_5, %c0_6], %5 {strides = array<i32>} : memref<8x64xf32, #tpu.memory_space<vmem>>, vector<8x64xf32>,
    return
  }
  func.func @transform_0(%arg0: i32) -> (i32, i32) {
    %c0_i32 = arith.constant 0 : i32
    %c0_i32_0 = arith.constant 0 : i32
    return %arg0, %c0_i32 : i32, i32
  }
  func.func @transform_1(%arg0: i32) -> (i32, i32) {
    %c0_i32 = arith.constant 0 : i32
    %c0_i32_0 = arith.constant 0 : i32
    %c0_i32_1 = arith.constant 0 : i32
    return %c0_i32, %c0_i32_0 : i32, i32
  }
  func.func @transform_2(%arg0: i32) -> (i32, i32) {
    %c0_i32 = arith.constant 0 : i32
    %c0_i32_0 = arith.constant 0 : i32
    %c0_i32_1 = arith.constant 0 : i32
    return %c0_i32, %c0_i32_0 : i32, i32
  }
  func.func @transform_3(%arg0: i32) -> (i32, i32) {
    %c0_i32 = arith.constant 0 : i32
    %c0_i32_0 = arith.constant 0 : i32
    return %arg0, %c0_i32 : i32, i32
  }
}

</mosaic_0001>

<bundles_post_ra>
// kernel: decoder_forward.1
= control target key start
LH: loop header
LB: loop body
LE: loop exit
PB: predicated region body
PF: predicated region fallthrough
CT: control target
= control target key end

     0   :  { %8 = vsyncpa [#allocation3], 0  ;;  %s658_s0 = inlined_call_operand.vmem [shape: f32[16,32], index: 0, kind: input, shape index: {}]   ;;  %s659_s1 = inlined_call_operand.vmem [shape: f32[64,32], index: 1, kind: input, shape index: {}]   ;;  %s660_s2 = inlined_call_operand.vmem [shape: f32[1,64], index: 2, kind: input, shape index: {}]   ;;  %s661_s3 = inlined_call_operand.hbm [shape: f32[16,64], index: 3, kind: output, shape index: {}]  }
   0x1   :  { %10 = vsyncpa [#allocation3 + $0x1], 0  ;;  %s529_s12 = smov 0   ;;  %s531_s13 = smov 0  }
   0x2   :  { %s533_s14 = smov 0   ;;  %s535_s15 = smov 0  }
   0x3 LB: > { %s550_s16 = sadd.s32 4294967295, %s504_s15   ;;  %s355_s17 = sadd.s32 4294967294, %s504_s15   ;;  %s504_s15 = sphi %s535_s15, %s667_s15   ;;  %s500_s14 = sphi %s533_s14, %s666_s14   ;;  %s496_s13 = sphi %s531_s13, %s665_s13   ;;  %s492_s12 = sphi %s529_s12, %s664_s12  }
   0x4   : > { %s554_s18 = sadd.s32 1, %s504_s15   ;;  %s91_s19 = sadd.s32 1, %s500_s14 }
   0x5   : > { %s88_s20 = ssub.s32 %s504_s15, %s554_s18  ;;  %p101_p0 = scmp.ne.s32.totalorder %s500_s14, %s496_s13 }
   0x6   : > { %p89_p1 = scmp.eq.s32.totalorder %s88_s20, 0  ;;  %p102_p2 = scmp.eq.s32.totalorder %s550_s16, 1 }
   0x7   : > { %p107_p3 = scmp.ne.s32.totalorder %s496_s13, %s492_s12  ;;  %p108_p4 = scmp.eq.s32.totalorder %s355_s17, 1 }
   0x8   : > { %s565_s21 = scalar_select %p89_p1, %s500_s14, %s91_s19  }
   0x9   : > { %p567_p5 = por %p102_p2, %p101_p0  ;;  %p571_p6 = por %p108_p4, %p107_p3 }
   0xa   : > { %p358_p7 = scmp.ge.s32.totalorder %s504_s15, 1  ;;  %p139_p8 = scmp.lt.s32.totalorder %s504_s15, 3 }
   0xc   : > { %p140_p9 = pnand %p358_p7, %p139_p8 }
   0xd   : > { %p162_p10 = scmp.lt.s32.totalorder (!%p140_p9), %s550_s16, 1  ;;  %s159_s27 = sand.u32 (!%p140_p9), 1, %s496_s13  }
   0xe   : > { %143 = sbr.rel (%p140_p9) target bundleno = 260 (0x104), region = 32  ;;  %s359_s28 = sshll.u32 (!%p140_p9), %s159_s27, 3 }
   0xf   : > { %s372_s4 = sshll.u32 (!%p140_p9), %s550_s16, 7  ;;  %s161_s5 = scalar_lea.vmem (!%p140_p9), [#allocation2], %s359_s28 }
  0x10   : > { %s296_s6 = sshll.u32 (!%p140_p9), %s161_s5, 4  ;;  %s283_s10 = scalar_lea.sflag (!%p140_p9), [#allocation3], %s159_s27  ;;  %s297_s6 = int_to_ptr.vmem [resolvable:$true] %s296_s6 }
  0x11   : > { %s444_s11 = scalar_lea.vmem (!%p140_p9), %s297_s6, 128 }
  0x12   : > { %p445_p11 = scmp.ne.s32.totalorder (!%p140_p9), %s297_s6, %s444_s11 }
  0x13   : > { %v174_v0 = vld [vmem:[%s659_s1 + $0x38] sm:$0xff]  ;;  %vm182_vm0 = vcmask 261120   ;;  %v506_v1 = vmov 0.0   ;;  %vm507_vm1 = vmmov 0   ;;  %v173_v2 = vld [vmem:[%s659_s1 + $0x30] sm:$0xff]  ;;  %v172_v3 = vld [vmem:[%s659_s1 + $0x28] sm:$0xff] }
  0x14   : > { %384 = vmatprep.subr.mxu0 %v506_v1  ;;  %400 = vmatprep.mubr.msk.f32.mxu0 %vm507_vm1, %v506_v1  ;;  %v171_v4 = vld [vmem:[%s659_s1 + $0x20] sm:$0xff]  ;;  %v170_v5 = vld [vmem:[%s659_s1 + $0x18] sm:$0xff]  ;;  %v169_v6 = vld [vmem:[%s659_s1 + $0x10] sm:$0xff]  ;;  %s163_s9 = scalar_select %p162_p10, %s550_s16, 1  ;;  %vm280_vm2 = vcmask 523264  }
  0x15   : > { %385 = vmatpush3.xpose.msk.msra.mxu0 %vm182_vm0, %v174_v0  ;;  %v168_v7 = vld [vmem:[%s659_s1 + $0x8] sm:$0xff]  ;;  %v167_v8 = vld [vmem:[%s659_s1] sm:$0xff]  ;;  %p446_p12 = pnand %p445_p11, %p567_p5  ;;  %s508_s16 = smov [#allocation2]  }
  0x16   : > { %386 = vmatprep.subr.mxu0 %v506_v1  ;;  %s360_s17 = sshll.u32 %s163_s9, 3  ;;  %v361_v10 = vld [vmem:[%s660_s2] ss:$0 sm:$0xff]  ;;  %s623_s9 = scalar_lea.hbm %s661_s3, %s372_s4 }
  0x17   : > { %s165_s26 = scalar_lea.vmem %s658_s0, %s360_s17  ;;  %p447_p13 = pneg %p446_p12 }
  0x18   : > { %v166_v9 = vld [vmem:[%s165_s26] sm:$0xff]  ;;  %s448_s17 = sshll.u32 %s508_s16, 4  ;;  %s449_s17 = int_to_ptr.vmem [resolvable:$false] %s448_s17 }
  0x19   : > { %387 = vmatpush3.xpose.msk.msra.mxu0 %vm182_vm0, %v173_v2  ;;  %s450_s19 = scalar_lea.vmem %s449_s17, 256  ;;  %p451_p0 = scmp.lt.s32.totalorder %s297_s6, %s449_s17 }
  0x1a   : > { %388 = vmatprep.subr.mxu0 %v506_v1  ;;  %p452_p1 = scmp.lt.s32.totalorder %s450_s19, %s444_s11 }
  0x1c   : > { %p453_p2 = por %p452_p1, %p451_p0 }
  0x1d   : > { %389 = vmatpush3.xpose.msk.msra.mxu0 %vm182_vm0, %v172_v3 }
  0x1e   : > { %390 = vmatprep.subr.mxu0 %v506_v1  ;;  %p454_p3 = pnand %p453_p2, %p447_p13 }
  0x21   : > { %391 = vmatpush3.xpose.msk.msra.mxu0 %vm182_vm0, %v171_v4 }
  0x22   : > { %392 = vmatprep.subr.mxu0 %v506_v1 }
  0x25   : > { %393 = vmatpush3.xpose.msk.msra.mxu0 %vm182_vm0, %v170_v5 }
  0x26   : > { %394 = vmatprep.subr.mxu0 %v506_v1 }
  0x29   : > { %395 = vmatpush3.xpose.msk.msra.mxu0 %vm182_vm0, %v169_v6 }
  0x2a   : > { %396 = vmatprep.subr.mxu0 %v506_v1 }
  0x2d   : > { %397 = vmatpush3.xpose.msk.msra.mxu0 %vm182_vm0, %v168_v7 }
  0x2e   : > { %398 = vmatprep.subr.mxu0 %v506_v1 }
  0x31   : > { %399 = vmatpush3.xpose.msk.msra.mxu0 %vm182_vm0, %v167_v8 }
  0x34   : > { %401 = vmatmul.mubr.msk.f32.vlgmr.msra.gmra.mxu0 %vm182_vm0, %v166_v9 }
  0xf4   : > { %v276_v11 = vpop.f32.mrf.mxu0 }
  0xf5   : > { %v277_v12 = vadd.f32 %v361_v10, %v276_v11 }
  0xf6   : > { %v402_v13 = vpop.f32.mrf.mxu0 }
  0xf7   : > { %281 = vst.msk [vmem:[%s161_s5] sm:$0xff] %vm280_vm2, %v277_v12 }
  0xf8   : > { %457 = shalt.err (!%p454_p3)
}
  0xf9   : > { %s458_s20 = scalar_lea.hbm %s623_s9, 128  ;;  %s462_s26 = scalar_lea.hbm %s661_s3, 256 }
  0xfa   : > { %p459_p4 = scmp.ne.s32.totalorder %s623_s9, %s458_s20  ;;  %p463_p9 = scmp.lt.s32.totalorder %s623_s9, %s661_s3 }
  0xfb   : > { %p464_p10 = scmp.lt.s32.totalorder %s462_s26, %s458_s20 }
  0xfc   : > { %p460_p7 = pnand %p459_p4, %p567_p5 }
  0xfd   : > { %p465_p11 = por %p464_p10, %p463_p9 }
  0xfe   : > { %p461_p8 = pneg %p460_p7 }
 0x100   : > { %p466_p12 = pnand %p465_p11, %p461_p8 }
 0x102   : > { %469 = shalt.err (!%p466_p12)
}
 0x103   : > { %403 = dma.vmem_to_hbm [thread:$0]  (%p567_p5), %s297_s6, 128, %s623_s9, %s283_s10  }
 0x104 PF: > { %p409_p13 = scmp.ge.s32.totalorder %s504_s15, 2  ;;  %s308_s29 = sand.u32 1, %s492_s12  }
 0x105   : > { %s309_s30 = scalar_lea.sflag [#allocation3], %s308_s29 }
 0x106   : > { %p406_p0 = pnand %p409_p13, %p571_p6 }
 0x108   : > { %p407_p1 = pneg %p406_p0 }
 0x10a   : > { %487 = dma.done.wait (%p407_p1), %s309_s30, 128  }
 0x10b   : > { %489 = vsyncadd (%p407_p1), %s309_s30, 4294967168  ;;  %p13_p2 = scmp.ge.s32.totalorder %s554_s18, 4   ;;  %s664_s12 = smov %s496_s13 }
 0x10c   : > { %s665_s13 = smov %s500_s14  ;;  %s666_s14 = smov %s565_s21 }
 0x10d   : > { %s667_s15 = smov %s554_s18  ;;  %15 = sbr.rel (!%p13_p2) target bundleno = 3 (0x3), region = 67 }
 0x112   :  { %314 = vsyncpa [#allocation3], 1 }
 0x113   :  { %316 = vsyncpa [#allocation3 + $0x1], 1 }

</bundles_post_ra>
